<compile_context>
chip_gen: v5e
topology: v5e:2x2
jax: 0.10.0
libtpu: 0.0.40
codegen_flags: <defaults>
</compile_context>

<pallas_src>
import jax
import jax.numpy as jnp
from jax.experimental import pallas as pl
from jax.experimental.pallas import tpu as pltpu

LANES = 128          # lane dimension (fixed by vreg layout)
ROW_TILE = 1024      # sublane rows per block: (1024,128) f32 = 512 KiB/block
NUM_SPLITS = 2       # leading "parallel" grid axis (megacore sharding on v7x)


def _mse_partial_kernel(a_ref, b_ref, o_ref):
    """Accumulate (a-b)^2 elementwise into a lane-shaped f32 output block."""
    t = pl.program_id(1)

    @pl.when(t == 0)
    def _():
        o_ref[...] = jnp.zeros_like(o_ref)

    d = a_ref[...].astype(jnp.float32) - b_ref[...].astype(jnp.float32)
    o_ref[...] += (d * d)[None, :, :]


def mse_loss(value, ground_truth):
    """Equivalent of nn.MSELoss()(value.float(), ground_truth.float())."""
    a = value.reshape(-1)
    b = ground_truth.reshape(-1)
    n = a.size
    if n == 0:
        # torch's MSELoss(mean) on empty input yields NaN.
        return jnp.float32(jnp.nan)

    # Pad once (zeros on both sides contribute 0 to the sum), reshape once.
    chunk = NUM_SPLITS * ROW_TILE * LANES
    pad = (-n) % chunk
    if pad:
        a = jnp.pad(a, (0, pad))
        b = jnp.pad(b, (0, pad))
    total_rows = (n + pad) // LANES
    tiles_per_split = total_rows // (NUM_SPLITS * ROW_TILE)
    a2 = a.reshape(total_rows, LANES)
    b2 = b.reshape(total_rows, LANES)

    partial = pl.pallas_call(
        _mse_partial_kernel,
        out_shape=jax.ShapeDtypeStruct(
            (NUM_SPLITS, ROW_TILE, LANES), jnp.float32),
        grid_spec=pltpu.PrefetchScalarGridSpec(
            num_scalar_prefetch=0,
            grid=(NUM_SPLITS, tiles_per_split),
            in_specs=[
                pl.BlockSpec((ROW_TILE, LANES),
                             lambda s, t: (s * tiles_per_split + t, 0)),
                pl.BlockSpec((ROW_TILE, LANES),
                             lambda s, t: (s * tiles_per_split + t, 0)),
            ],
            out_specs=pl.BlockSpec((1, ROW_TILE, LANES),
                                   lambda s, t: (s, 0, 0)),
        ),
        compiler_params=pltpu.CompilerParams(
            dimension_semantics=("parallel", "arbitrary")),
    )(a2, b2)

    # Tiny final reduction + mean in plain JAX.
    return jnp.sum(partial) / jnp.float32(n)


if __name__ == "__main__":
    key = jax.random.PRNGKey(0)
    k1, k2 = jax.random.split(key)
    # Small shapes consistent with the module's forward (generic tensors).
    value = jax.random.normal(k1, (2, 4, 16, 16), dtype=jnp.float32)
    ground_truth = jax.random.normal(k2, (2, 4, 16, 16), dtype=jnp.float32)

    out = mse_loss(value, ground_truth)
    jax.block_until_ready(out)

    # Cross-check against plain JAX reference.
    ref = jnp.mean((value - ground_truth) ** 2)
    assert jnp.allclose(out, ref, rtol=1e-5, atol=1e-6), (out, ref)

    print("KERNEL_OK")
</pallas_src>

<mosaic_0001>
module attributes {stable_mosaic.version = 11 : i64} {
  func.func @_mse_partial_kernel(%arg0: i32, %arg1: i32, %arg2: memref<1024x128xf32, #tpu.memory_space<vmem>>, %arg3: memref<1024x128xf32, #tpu.memory_space<vmem>>, %arg4: memref<1x1024x128xf32, #tpu.memory_space<vmem>>) attributes {dimension_semantics = [#tpu.dimension_semantics<parallel>, #tpu.dimension_semantics<arbitrary>], iteration_bounds = array<i64: 2, 1>, scalar_prefetch = 0 : i64, scratch_operands = 0 : i64, tpu.core_type = #tpu.core_type<tc>, window_params = [{transform_indices = @transform_0, window_bounds = array<i64: 1024, 128>}, {transform_indices = @transform_1, window_bounds = array<i64: 1024, 128>}, {transform_indices = @transform_2, window_bounds = array<i64: 1, 1024, 128>}]} {
    %c0_i32 = arith.constant 0 : i32
    %0 = arith.cmpi eq, %arg1, %c0_i32 : i32
    %1 = arith.extui %0 : i1 to i32
    %c0_i32_0 = arith.constant 0 : i32
    %2 = arith.cmpi ne, %1, %c0_i32_0 : i32
    scf.if %2 {
      %cst = arith.constant 0.000000e+00 : f32
      %11 = vector.broadcast %cst : f32 to vector<1x1024x128xf32>
      %c0_10 = arith.constant 0 : index
      %c0_11 = arith.constant 0 : index
      %c0_12 = arith.constant 0 : index
      %12 = vector.load %arg4[%c0_10, %c0_11, %c0_12] : memref<1x1024x128xf32, #tpu.memory_space<vmem>>, vector<1x1024x128xf32>
      tpu.vector_store %arg4[%c0_10, %c0_11, %c0_12], %11 {strides = array<i32>} : memref<1x1024x128xf32, #tpu.memory_space<vmem>>, vector<1x1024x128xf32>,
    } else {
    }
    %c0 = arith.constant 0 : index
    %c0_1 = arith.constant 0 : index
    %3 = vector.load %arg2[%c0, %c0_1] : memref<1024x128xf32, #tpu.memory_space<vmem>>, vector<1024x128xf32>
    %c0_2 = arith.constant 0 : index
    %c0_3 = arith.constant 0 : index
    %4 = vector.load %arg3[%c0_2, %c0_3] : memref<1024x128xf32, #tpu.memory_space<vmem>>, vector<1024x128xf32>
    %5 = arith.subf %3, %4 : vector<1024x128xf32>
    %c0_4 = arith.constant 0 : index
    %c0_5 = arith.constant 0 : index
    %c0_6 = arith.constant 0 : index
    %6 = vector.load %arg4[%c0_4, %c0_5, %c0_6] : memref<1x1024x128xf32, #tpu.memory_space<vmem>>, vector<1x1024x128xf32>
    %7 = arith.mulf %5, %5 : vector<1024x128xf32>
    %8 = vector.shape_cast %7 : vector<1024x128xf32> to vector<1x1024x128xf32>
    %9 = arith.addf %6, %8 : vector<1x1024x128xf32>
    %c0_7 = arith.constant 0 : index
    %c0_8 = arith.constant 0 : index
    %c0_9 = arith.constant 0 : index
    %10 = vector.load %arg4[%c0_7, %c0_8, %c0_9] : memref<1x1024x128xf32, #tpu.memory_space<vmem>>, vector<1x1024x128xf32>
    tpu.vector_store %arg4[%c0_7, %c0_8, %c0_9], %9 {strides = array<i32>} : memref<1x1024x128xf32, #tpu.memory_space<vmem>>, vector<1x1024x128xf32>,
    return
  }
  func.func @transform_0(%arg0: i32, %arg1: i32) -> (i32, i32) {
    %c1_i32 = arith.constant 1 : i32
    %0 = arith.muli %arg0, %c1_i32 : i32
    %1 = arith.addi %0, %arg1 : i32
    %c0_i32 = arith.constant 0 : i32
    %c0_i32_0 = arith.constant 0 : i32
    return %1, %c0_i32 : i32, i32
  }
  func.func @transform_1(%arg0: i32, %arg1: i32) -> (i32, i32) {
    %c1_i32 = arith.constant 1 : i32
    %0 = arith.muli %arg0, %c1_i32 : i32
    %1 = arith.addi %0, %arg1 : i32
    %c0_i32 = arith.constant 0 : i32
    %c0_i32_0 = arith.constant 0 : i32
    return %1, %c0_i32 : i32, i32
  }
  func.func @transform_2(%arg0: i32, %arg1: i32) -> (i32, i32, i32) {
    %c0_i32 = arith.constant 0 : i32
    %c0_i32_0 = arith.constant 0 : i32
    %c0_i32_1 = arith.constant 0 : i32
    return %arg0, %c0_i32, %c0_i32_0 : i32, i32, i32
  }
}

</mosaic_0001>

<bundles_post_ra>
// kernel: tpu_custom_call.1
= control target key start
LH: loop header
LB: loop body
LE: loop exit
PB: predicated region body
PF: predicated region fallthrough
CT: control target
= control target key end

     0   :  { %7 = vsyncpa [#allocation3], 0  ;;  %s2176_s0 = inlined_call_operand.hbm [shape: f32[2048,128], index: 0, kind: input, shape index: {}]   ;;  %s2177_s1 = inlined_call_operand.hbm [shape: f32[2048,128], index: 1, kind: input, shape index: {}]   ;;  %s2178_s2 = inlined_call_operand.hbm [shape: f32[2,1024,128], index: 2, kind: output, shape index: {}]  }
   0x1   :  { %9 = vsyncpa [#allocation3 + $0x1], 0 }
   0x2   :  { %10 = vsyncpa [#allocation6], 0 }
   0x3   :  { %12 = vsyncpa [#allocation6 + $0x1], 0 }
   0x4   :  { %13 = vsyncpa [#allocation4], 0 }
   0x5   :  { %15 = vsyncpa [#allocation4 + $0x1], 0  ;;  %s1639_s9 = smov 0   ;;  %s1641_s10 = smov 0  }
   0x6   :  { %s1643_s11 = smov 0   ;;  %s1645_s12 = smov 0  }
   0x7   :  { %s1647_s13 = smov 0   ;;  %s1649_s14 = smov 0  }
   0x8 LB: > { %s1378_s15 = sadd.s32 4294967295, %s1618_s14   ;;  %s1379_s16 = sadd.s32 4294967294, %s1618_s14   ;;  %s1618_s14 = sphi %s1649_s14, %s21_s14   ;;  %s1614_s13 = sphi %s1647_s13, %s2188_s13   ;;  %s1610_s12 = sphi %s1645_s12, %s2187_s12   ;;  %s1606_s11 = sphi %s1643_s11, %s2186_s11   ;;  %s1602_s10 = sphi %s1641_s10, %s2185_s10   ;;  %s1598_s9 = sphi %s1639_s9, %s2184_s9  }
   0x9   : > { %s33_s17 = sadd.s32 1, %s1614_s13  ;;  %s42_s18 = sadd.s32 1, %s1606_s11 }
   0xa   : > { %p35_p0 = scmp.ge.s32.totalorder %s33_s17, 2  ;;  %p49_p1 = scmp.ne.s32.totalorder %s1606_s11, %s1602_s10 }
   0xb   : > { %p50_p2 = scmp.eq.s32.totalorder %s1618_s14, 0  ;;  %p55_p3 = scmp.ne.s32.totalorder %s1602_s10, %s1598_s9 }
   0xc   : > { %s2190_s17 = smov (%p35_p0, %s33_s17), 0  ;;  %p56_p5 = scmp.eq.s32.totalorder %s1378_s15, 0 }
   0xd   : > { %p1680_p4 = por %p50_p2, %p49_p1  ;;  %s39_s20 = ssub.s32 %s1614_s13, %s2190_s17 }
   0xe   : > { %p107_p6 = scmp.eq.s32.totalorder %s1378_s15, 1  ;;  %p40_p7 = scmp.eq.s32.totalorder %s39_s20, 0 }
   0xf   : > { %p1686_p8 = por %p56_p5, %p55_p3  ;;  %p113_p10 = scmp.eq.s32.totalorder %s1379_s16, 1 }
  0x10   : > { %p1690_p9 = por %p107_p6, %p49_p1  ;;  %p1381_p12 = scmp.ge.s32.totalorder %s1618_s14, 2 }
  0x11   : > { %s1695_s23 = scalar_select %p40_p7, %s1606_s11, %s42_s18  }
  0x12   : > { %p1697_p11 = por %p113_p10, %p55_p3  ;;  %p1417_p13 = scmp.lt.s32.totalorder %s1618_s14, 2 }
  0x13   : > { %s1704_s25 = sand.u32 1, %s1606_s11   ;;  %s1397_s27 = sshll.u32 %s1614_s13, 10 }
  0x14   : > { %s1382_s26 = sshll.u32 %s1704_s25, 10  ;;  %s143_s30 = scalar_lea.hbm %s2176_s0, %s1397_s27 }
  0x15   : > { %s137_s3 = scalar_lea.vmem [#allocation2], %s1382_s26  ;;  %s144_s5 = sshll.u32 %s143_s30, 4  ;;  %s145_s5 = int_to_ptr.hbm [resolvable:$true] %s144_s5 }
  0x16   : > { %s146_s4 = sshll.u32 %s137_s3, 4  ;;  %p1713_p0 = pnand %p1417_p13, %p1680_p4  ;;  %s147_s4 = int_to_ptr.vmem [resolvable:$true] %s146_s4 }
  0x17   : > { %p1388_p1 = scmp.ge.s32.totalorder %s1618_s14, 1  ;;  %s134_s7 = scalar_lea.sflag [#allocation3], %s1704_s25 }
  0x18   : > { %s1620_s8 = smov 128   ;;  %s1621_s15 = smov 8  }
  0x19   : > { %1409 = dma.hbm_to_vmem [thread:$0]  (!%p1713_p0), %s145_s5, 16384, %s147_s4, %s134_s7, %s1620_s8, %s1620_s8, %s1621_s15  }
  0x1a   : > { %p177_p2 = scmp.lt.s32.totalorder %s1618_s14, 3  ;;  %s166_s20 = scalar_lea.hbm %s2177_s1, %s1397_s27 }
  0x1b   : > { %s167_s28 = sshll.u32 %s166_s20, 4  ;;  %s160_s19 = scalar_lea.vmem [#allocation5], %s1382_s26  ;;  %s168_s28 = int_to_ptr.hbm [resolvable:$true] %s167_s28 }
  0x1c   : > { %p178_p3 = pnand %p1388_p1, %p177_p2  ;;  %s169_s29 = sshll.u32 %s160_s19, 4  ;;  %s170_s29 = int_to_ptr.vmem [resolvable:$true] %s169_s29 }
  0x1d   : > { %s157_s30 = scalar_lea.sflag [#allocation6], %s1704_s25  ;;  %s1729_s3 = sand.u32 (!%p178_p3), 1, %s1602_s10  }
  0x1e   : > { %1412 = dma.hbm_to_vmem [thread:$0]  (!%p1713_p0), %s168_s28, 16384, %s170_s29, %s157_s30, %s1620_s8, %s1620_s8, %s1621_s15  }
  0x1f   : > { %181 = sbr.rel (%p178_p3) target bundleno = 176 (0xb0), region = 28  ;;  %s1732_s4 = sshll.u32 (!%p178_p3), %s1729_s3, 10 }
  0x20   : > { %s184_s27 = scalar_lea.sflag (!%p178_p3), [#allocation3], %s1729_s3  ;;  %s1736_s5 = scalar_lea.vmem (!%p178_p3), [#allocation2], %s1732_s4 }
  0x24   : > { %1585 = dma.done.wait (%p1686_p8), %s184_s27, 16384  }
  0x25   : > { %1587 = vsyncadd (%p1686_p8), %s184_s27, 4294950912  ;;  %s194_s25 = scalar_lea.sflag [#allocation6], %s1729_s3  ;;  %s1744_s26 = scalar_lea.vmem [#allocation5], %s1732_s4 }
  0x26   : > { %1589 = dma.done.wait (%p1686_p8), %s194_s25, 16384  }
  0x27   : > { %1591 = vsyncadd (%p1686_p8), %s194_s25, 4294950912  ;;  %v360_v0 = vld [vmem:[%s1736_s5] sm:$0xff]  ;;  %v361_v2 = vld [vmem:[%s1736_s5 + $0x8] sm:$0xff]  ;;  %s1772_s21 = scalar_lea.vmem [#allocation7], %s1732_s4  ;;  %s1399_s6 = sshll.u32 %s1610_s12, 10 }
  0x28   : > { %v488_v1 = vld [vmem:[%s1744_s26] sm:$0xff]  ;;  %v489_v4 = vld [vmem:[%s1744_s26 + $0x8] sm:$0xff]  ;;  %v362_v5 = vld [vmem:[%s1736_s5 + $0x10] sm:$0xff]  ;;  %s1268_s15 = scalar_lea.hbm %s2178_s2, %s1399_s6  ;;  %s1269_s12 = sshll.u32 %s1772_s21, 4  ;;  %s1270_s12 = int_to_ptr.vmem [resolvable:$true] %s1269_s12 }
  0x29   : > { %v616_v3 = vsub.f32 %v360_v0, %v488_v1  ;;  %v490_v6 = vld [vmem:[%s1744_s26 + $0x10] sm:$0xff]  ;;  %v617_v7 = vsub.f32 %v361_v2, %v489_v4  ;;  %v363_v9 = vld [vmem:[%s1736_s5 + $0x18] sm:$0xff]  ;;  %v364_v11 = vld [vmem:[%s1736_s5 + $0x20] sm:$0xff]  ;;  %s1271_s16 = sshll.u32 %s1268_s15, 4  ;;  %s1257_s18 = scalar_lea.sflag [#allocation4], %s1729_s3  ;;  %s1272_s16 = int_to_ptr.hbm [resolvable:$true] %s1271_s16 }
  0x2a   : > { %v618_v8 = vsub.f32 %v362_v5, %v490_v6  ;;  %v491_v10 = vld [vmem:[%s1744_s26 + $0x18] sm:$0xff]  ;;  %v492_v14 = vld [vmem:[%s1744_s26 + $0x20] sm:$0xff]  ;;  %v365_v15 = vld [vmem:[%s1736_s5 + $0x28] sm:$0xff]  ;;  %s1546_s20 = sshra.s32 %s1272_s16, 4  ;;  %s1552_s30 = scalar_lea.hbm %s2178_s2, 2048  ;;  %s1547_s20 = int_to_ptr.hbm [resolvable:$true] %s1546_s20 }
  0x2b   : > { %v872_v12 = vmul.f32 %v616_v3, %v616_v3  ;;  %v619_v13 = vsub.f32 %v363_v9, %v491_v10  ;;  %v493_v16 = vld [vmem:[%s1744_s26 + $0x28] sm:$0xff]  ;;  %v873_v17 = vmul.f32 %v617_v7, %v617_v7  ;;  %v620_v19 = vsub.f32 %v364_v11, %v492_v14  ;;  %v366_v21 = vld [vmem:[%s1736_s5 + $0x30] sm:$0xff]  ;;  %v367_v23 = vld [vmem:[%s1736_s5 + $0x38] sm:$0xff]  ;;  %s1548_s28 = scalar_lea.hbm %s1547_s20, 1024  ;;  %p1553_p7 = scmp.lt.s32.totalorder %s1547_s20, %s2178_s2 }
  0x2c   : > { %v874_v18 = vmul.f32 %v618_v8, %v618_v8  ;;  %v621_v20 = vsub.f32 %v365_v15, %v493_v16  ;;  %v494_v22 = vld [vmem:[%s1744_s26 + $0x30] sm:$0xff]  ;;  %v495_v26 = vld [vmem:[%s1744_s26 + $0x38] sm:$0xff]  ;;  %v368_v27 = vld [vmem:[%s1736_s5 + $0x40] sm:$0xff]  ;;  %p1549_p4 = scmp.ne.s32.totalorder %s1547_s20, %s1548_s28  ;;  %p1554_p8 = scmp.lt.s32.totalorder %s1552_s30, %s1548_s28 }
  0x2d   : > { %v875_v24 = vmul.f32 %v619_v13, %v619_v13  ;;  %v622_v25 = vsub.f32 %v366_v21, %v494_v22  ;;  %v496_v28 = vld [vmem:[%s1744_s26 + $0x40] sm:$0xff]  ;;  %v876_v29 = vmul.f32 %v620_v19, %v620_v19  ;;  %v369_v31 = vld [vmem:[%s1736_s5 + $0x48] sm:$0xff]  ;;  %v370_v33 = vld [vmem:[%s1736_s5 + $0x50] sm:$0xff]  ;;  %1128 = vst [vmem:[%s1772_s21] sm:$0xff] %v872_v12  ;;  %v623_v35 = vsub.f32 %v367_v23, %v495_v26 }
  0x2e   : > { %v877_v30 = vmul.f32 %v621_v20, %v621_v20  ;;  %v497_v32 = vld [vmem:[%s1744_s26 + $0x48] sm:$0xff]  ;;  %v624_v36 = vsub.f32 %v368_v27, %v496_v28  ;;  %v498_v37 = vld [vmem:[%s1744_s26 + $0x50] sm:$0xff]  ;;  %v371_v38 = vld [vmem:[%s1736_s5 + $0x58] sm:$0xff]  ;;  %1129 = vst [vmem:[%s1772_s21 + $0x8] sm:$0xff] %v873_v17  ;;  %p1550_p5 = pnand %p1549_p4, %p1690_p9  ;;  %p1555_p10 = por %p1554_p8, %p1553_p7 }
  0x2f   : > { %v878_v34 = vmul.f32 %v622_v25, %v622_v25  ;;  %v499_v39 = vld [vmem:[%s1744_s26 + $0x58] sm:$0xff]  ;;  %v625_v40 = vsub.f32 %v369_v31, %v497_v32  ;;  %v626_v41 = vsub.f32 %v370_v33, %v498_v37  ;;  %v372_v42 = vld [vmem:[%s1736_s5 + $0x60] sm:$0xff]  ;;  %v373_v44 = vld [vmem:[%s1736_s5 + $0x68] sm:$0xff]  ;;  %1130 = vst [vmem:[%s1772_s21 + $0x10] sm:$0xff] %v874_v18  ;;  %v879_v45 = vmul.f32 %v623_v35, %v623_v35 }
  0x30   : > { %v500_v43 = vld [vmem:[%s1744_s26 + $0x60] sm:$0xff]  ;;  %v880_v46 = vmul.f32 %v624_v36, %v624_v36  ;;  %v627_v47 = vsub.f32 %v371_v38, %v499_v39  ;;  %v501_v48 = vld [vmem:[%s1744_s26 + $0x68] sm:$0xff]  ;;  %v374_v49 = vld [vmem:[%s1736_s5 + $0x70] sm:$0xff]  ;;  %1131 = vst [vmem:[%s1772_s21 + $0x18] sm:$0xff] %v875_v24  ;;  %p1551_p6 = pneg %p1550_p5 }
  0x31   : > { %v502_v50 = vld [vmem:[%s1744_s26 + $0x70] sm:$0xff]  ;;  %v881_v51 = vmul.f32 %v625_v40, %v625_v40  ;;  %v882_v52 = vmul.f32 %v626_v41, %v626_v41  ;;  %v628_v53 = vsub.f32 %v372_v42, %v500_v43  ;;  %v629_v54 = vsub.f32 %v373_v44, %v501_v48  ;;  %v375_v55 = vld [vmem:[%s1736_s5 + $0x78] sm:$0xff]  ;;  %v376_v57 = vld [vmem:[%s1736_s5 + $0x80] sm:$0xff]  ;;  %1132 = vst [vmem:[%s1772_s21 + $0x20] sm:$0xff] %v876_v29 }
  0x32   : > { %v503_v56 = vld [vmem:[%s1744_s26 + $0x78] sm:$0xff]  ;;  %v883_v58 = vmul.f32 %v627_v47, %v627_v47  ;;  %v630_v59 = vsub.f32 %v374_v49, %v502_v50  ;;  %v504_v60 = vld [vmem:[%s1744_s26 + $0x80] sm:$0xff]  ;;  %v377_v61 = vld [vmem:[%s1736_s5 + $0x88] sm:$0xff]  ;;  %1133 = vst [vmem:[%s1772_s21 + $0x28] sm:$0xff] %v877_v30  ;;  %p1556_p13 = pnand %p1555_p10, %p1551_p6 }
  0x33   : > { %v505_v62 = vld [vmem:[%s1744_s26 + $0x88] sm:$0xff]  ;;  %v884_v63 = vmul.f32 %v628_v53, %v628_v53  ;;  %v885_v0 = vmul.f32 %v629_v54, %v629_v54  ;;  %v378_v1 = vld [vmem:[%s1736_s5 + $0x90] sm:$0xff]  ;;  %v379_v3 = vld [vmem:[%s1736_s5 + $0x98] sm:$0xff]  ;;  %1134 = vst [vmem:[%s1772_s21 + $0x30] sm:$0xff] %v878_v34  ;;  %v631_v5 = vsub.f32 %v375_v55, %v503_v56  ;;  %v632_v6 = vsub.f32 %v376_v57, %v504_v60 }
  0x34   : > { %v506_v2 = vld [vmem:[%s1744_s26 + $0x90] sm:$0xff]  ;;  %v886_v4 = vmul.f32 %v630_v59, %v630_v59  ;;  %v507_v7 = vld [vmem:[%s1744_s26 + $0x98] sm:$0xff]  ;;  %v380_v8 = vld [vmem:[%s1736_s5 + $0xa0] sm:$0xff]  ;;  %1135 = vst [vmem:[%s1772_s21 + $0x38] sm:$0xff] %v879_v45  ;;  %v633_v10 = vsub.f32 %v377_v61, %v505_v62 }
  0x35   : > { %v508_v9 = vld [vmem:[%s1744_s26 + $0xa0] sm:$0xff]  ;;  %v634_v11 = vsub.f32 %v378_v1, %v506_v2  ;;  %v381_v12 = vld [vmem:[%s1736_s5 + $0xa8] sm:$0xff]  ;;  %v382_v14 = vld [vmem:[%s1736_s5 + $0xb0] sm:$0xff]  ;;  %1136 = vst [vmem:[%s1772_s21 + $0x40] sm:$0xff] %v880_v46  ;;  %v887_v15 = vmul.f32 %v631_v5, %v631_v5  ;;  %v888_v16 = vmul.f32 %v632_v6, %v632_v6  ;;  %v635_v17 = vsub.f32 %v379_v3, %v507_v7 }
  0x36   : > { %v509_v13 = vld [vmem:[%s1744_s26 + $0xa8] sm:$0xff]  ;;  %v510_v18 = vld [vmem:[%s1744_s26 + $0xb0] sm:$0xff]  ;;  %v383_v19 = vld [vmem:[%s1736_s5 + $0xb8] sm:$0xff]  ;;  %1137 = vst [vmem:[%s1772_s21 + $0x48] sm:$0xff] %v881_v51  ;;  %v889_v20 = vmul.f32 %v633_v10, %v633_v10  ;;  %v636_v21 = vsub.f32 %v380_v8, %v508_v9 }
  0x37   : > { %v637_v22 = vsub.f32 %v381_v12, %v509_v13  ;;  %v511_v23 = vld [vmem:[%s1744_s26 + $0xb8] sm:$0xff]  ;;  %v384_v24 = vld [vmem:[%s1736_s5 + $0xc0] sm:$0xff]  ;;  %1138 = vst [vmem:[%s1772_s21 + $0x50] sm:$0xff] %v882_v52  ;;  %v890_v26 = vmul.f32 %v634_v11, %v634_v11  ;;  %v638_v27 = vsub.f32 %v382_v14, %v510_v18  ;;  %v385_v28 = vld [vmem:[%s1736_s5 + $0xc8] sm:$0xff]  ;;  %v891_v30 = vmul.f32 %v635_v17, %v635_v17 }
  0x38   : > { %v512_v25 = vld [vmem:[%s1744_s26 + $0xc0] sm:$0xff]  ;;  %v513_v29 = vld [vmem:[%s1744_s26 + $0xc8] sm:$0xff]  ;;  %1139 = vst [vmem:[%s1772_s21 + $0x58] sm:$0xff] %v883_v58  ;;  %v386_v31 = vld [vmem:[%s1736_s5 + $0xd0] sm:$0xff]  ;;  %v892_v33 = vmul.f32 %v636_v21, %v636_v21  ;;  %v639_v34 = vsub.f32 %v383_v19, %v511_v23 }
  0x39   : > { %v514_v32 = vld [vmem:[%s1744_s26 + $0xd0] sm:$0xff]  ;;  %1140 = vst [vmem:[%s1772_s21 + $0x60] sm:$0xff] %v884_v63  ;;  %v640_v35 = vsub.f32 %v384_v24, %v512_v25  ;;  %v387_v36 = vld [vmem:[%s1736_s5 + $0xd8] sm:$0xff]  ;;  %v893_v38 = vmul.f32 %v637_v22, %v637_v22  ;;  %v641_v39 = vsub.f32 %v385_v28, %v513_v29  ;;  %v388_v40 = vld [vmem:[%s1736_s5 + $0xe0] sm:$0xff]  ;;  %v894_v42 = vmul.f32 %v638_v27, %v638_v27 }
  0x3a   : > { %v515_v37 = vld [vmem:[%s1744_s26 + $0xd8] sm:$0xff]  ;;  %1141 = vst [vmem:[%s1772_s21 + $0x68] sm:$0xff] %v885_v0  ;;  %v516_v41 = vld [vmem:[%s1744_s26 + $0xe0] sm:$0xff]  ;;  %v642_v43 = vsub.f32 %v386_v31, %v514_v32  ;;  %v389_v44 = vld [vmem:[%s1736_s5 + $0xe8] sm:$0xff]  ;;  %v895_v46 = vmul.f32 %v639_v34, %v639_v34 }
  0x3b   : > { %1142 = vst [vmem:[%s1772_s21 + $0x70] sm:$0xff] %v886_v4  ;;  %v517_v45 = vld [vmem:[%s1744_s26 + $0xe8] sm:$0xff]  ;;  %v643_v47 = vsub.f32 %v387_v36, %v515_v37  ;;  %v390_v48 = vld [vmem:[%s1736_s5 + $0xf0] sm:$0xff]  ;;  %v896_v50 = vmul.f32 %v640_v35, %v640_v35  ;;  %v644_v51 = vsub.f32 %v388_v40, %v516_v41  ;;  %v391_v52 = vld [vmem:[%s1736_s5 + $0xf8] sm:$0xff]  ;;  %v897_v54 = vmul.f32 %v641_v39, %v641_v39 }
  0x3c   : > { %1143 = vst [vmem:[%s1772_s21 + $0x78] sm:$0xff] %v887_v15  ;;  %v518_v49 = vld [vmem:[%s1744_s26 + $0xf0] sm:$0xff]  ;;  %v519_v53 = vld [vmem:[%s1744_s26 + $0xf8] sm:$0xff]  ;;  %v645_v55 = vsub.f32 %v389_v44, %v517_v45  ;;  %v392_v56 = vld [vmem:[%s1736_s5 + $0x100] sm:$0xff]  ;;  %v898_v58 = vmul.f32 %v642_v43, %v642_v43 }
  0x3d   : > { %1144 = vst [vmem:[%s1772_s21 + $0x80] sm:$0xff] %v888_v16  ;;  %v520_v57 = vld [vmem:[%s1744_s26 + $0x100] sm:$0xff]  ;;  %v646_v59 = vsub.f32 %v390_v48, %v518_v49  ;;  %v393_v60 = vld [vmem:[%s1736_s5 + $0x108] sm:$0xff]  ;;  %v899_v62 = vmul.f32 %v643_v47, %v643_v47  ;;  %v647_v63 = vsub.f32 %v391_v52, %v519_v53  ;;  %v394_v0 = vld [vmem:[%s1736_s5 + $0x110] sm:$0xff]  ;;  %v900_v2 = vmul.f32 %v644_v51, %v644_v51 }
  0x3e   : > { %1145 = vst [vmem:[%s1772_s21 + $0x88] sm:$0xff] %v889_v20  ;;  %v521_v61 = vld [vmem:[%s1744_s26 + $0x108] sm:$0xff]  ;;  %v522_v1 = vld [vmem:[%s1744_s26 + $0x110] sm:$0xff]  ;;  %v648_v3 = vsub.f32 %v392_v56, %v520_v57  ;;  %v395_v4 = vld [vmem:[%s1736_s5 + $0x118] sm:$0xff]  ;;  %v901_v6 = vmul.f32 %v645_v55, %v645_v55 }
  0x3f   : > { %1146 = vst [vmem:[%s1772_s21 + $0x90] sm:$0xff] %v890_v26  ;;  %v523_v5 = vld [vmem:[%s1744_s26 + $0x118] sm:$0xff]  ;;  %v649_v7 = vsub.f32 %v393_v60, %v521_v61  ;;  %v396_v8 = vld [vmem:[%s1736_s5 + $0x120] sm:$0xff]  ;;  %v902_v10 = vmul.f32 %v646_v59, %v646_v59  ;;  %v650_v11 = vsub.f32 %v394_v0, %v522_v1  ;;  %v397_v12 = vld [vmem:[%s1736_s5 + $0x128] sm:$0xff]  ;;  %v903_v14 = vmul.f32 %v647_v63, %v647_v63 }
  0x40   : > { %1147 = vst [vmem:[%s1772_s21 + $0x98] sm:$0xff] %v891_v30  ;;  %v524_v9 = vld [vmem:[%s1744_s26 + $0x120] sm:$0xff]  ;;  %v525_v13 = vld [vmem:[%s1744_s26 + $0x128] sm:$0xff]  ;;  %v651_v15 = vsub.f32 %v395_v4, %v523_v5  ;;  %v398_v16 = vld [vmem:[%s1736_s5 + $0x130] sm:$0xff]  ;;  %v904_v18 = vmul.f32 %v648_v3, %v648_v3 }
  0x41   : > { %1148 = vst [vmem:[%s1772_s21 + $0xa0] sm:$0xff] %v892_v33  ;;  %v526_v17 = vld [vmem:[%s1744_s26 + $0x130] sm:$0xff]  ;;  %v652_v19 = vsub.f32 %v396_v8, %v524_v9  ;;  %v399_v20 = vld [vmem:[%s1736_s5 + $0x138] sm:$0xff]  ;;  %v905_v22 = vmul.f32 %v649_v7, %v649_v7  ;;  %v653_v23 = vsub.f32 %v397_v12, %v525_v13  ;;  %v400_v24 = vld [vmem:[%s1736_s5 + $0x140] sm:$0xff]  ;;  %v906_v26 = vmul.f32 %v650_v11, %v650_v11 }
  0x42   : > { %1149 = vst [vmem:[%s1772_s21 + $0xa8] sm:$0xff] %v893_v38  ;;  %v527_v21 = vld [vmem:[%s1744_s26 + $0x138] sm:$0xff]  ;;  %v528_v25 = vld [vmem:[%s1744_s26 + $0x140] sm:$0xff]  ;;  %v654_v27 = vsub.f32 %v398_v16, %v526_v17  ;;  %v401_v28 = vld [vmem:[%s1736_s5 + $0x148] sm:$0xff]  ;;  %v907_v30 = vmul.f32 %v651_v15, %v651_v15 }
  0x43   : > { %1150 = vst [vmem:[%s1772_s21 + $0xb0] sm:$0xff] %v894_v42  ;;  %v529_v29 = vld [vmem:[%s1744_s26 + $0x148] sm:$0xff]  ;;  %v655_v31 = vsub.f32 %v399_v20, %v527_v21  ;;  %v402_v32 = vld [vmem:[%s1736_s5 + $0x150] sm:$0xff]  ;;  %v908_v34 = vmul.f32 %v652_v19, %v652_v19  ;;  %v656_v35 = vsub.f32 %v400_v24, %v528_v25  ;;  %v403_v36 = vld [vmem:[%s1736_s5 + $0x158] sm:$0xff]  ;;  %v909_v38 = vmul.f32 %v653_v23, %v653_v23 }
  0x44   : > { %1151 = vst [vmem:[%s1772_s21 + $0xb8] sm:$0xff] %v895_v46  ;;  %v530_v33 = vld [vmem:[%s1744_s26 + $0x150] sm:$0xff]  ;;  %v531_v37 = vld [vmem:[%s1744_s26 + $0x158] sm:$0xff]  ;;  %v657_v39 = vsub.f32 %v401_v28, %v529_v29  ;;  %v404_v40 = vld [vmem:[%s1736_s5 + $0x160] sm:$0xff]  ;;  %v910_v42 = vmul.f32 %v654_v27, %v654_v27 }
  0x45   : > { %1152 = vst [vmem:[%s1772_s21 + $0xc0] sm:$0xff] %v896_v50  ;;  %v532_v41 = vld [vmem:[%s1744_s26 + $0x160] sm:$0xff]  ;;  %v658_v43 = vsub.f32 %v402_v32, %v530_v33  ;;  %v405_v44 = vld [vmem:[%s1736_s5 + $0x168] sm:$0xff]  ;;  %v911_v46 = vmul.f32 %v655_v31, %v655_v31  ;;  %v659_v47 = vsub.f32 %v403_v36, %v531_v37  ;;  %v406_v48 = vld [vmem:[%s1736_s5 + $0x170] sm:$0xff]  ;;  %v912_v50 = vmul.f32 %v656_v35, %v656_v35 }
  0x46   : > { %1153 = vst [vmem:[%s1772_s21 + $0xc8] sm:$0xff] %v897_v54  ;;  %v533_v45 = vld [vmem:[%s1744_s26 + $0x168] sm:$0xff]  ;;  %v534_v49 = vld [vmem:[%s1744_s26 + $0x170] sm:$0xff]  ;;  %v660_v51 = vsub.f32 %v404_v40, %v532_v41  ;;  %v407_v52 = vld [vmem:[%s1736_s5 + $0x178] sm:$0xff]  ;;  %v913_v54 = vmul.f32 %v657_v39, %v657_v39 }
  0x47   : > { %1154 = vst [vmem:[%s1772_s21 + $0xd0] sm:$0xff] %v898_v58  ;;  %v535_v53 = vld [vmem:[%s1744_s26 + $0x178] sm:$0xff]  ;;  %v661_v55 = vsub.f32 %v405_v44, %v533_v45  ;;  %v408_v56 = vld [vmem:[%s1736_s5 + $0x180] sm:$0xff]  ;;  %v914_v58 = vmul.f32 %v658_v43, %v658_v43  ;;  %v662_v59 = vsub.f32 %v406_v48, %v534_v49  ;;  %v409_v60 = vld [vmem:[%s1736_s5 + $0x188] sm:$0xff] }
  0x48   : > { %1155 = vst [vmem:[%s1772_s21 + $0xd8] sm:$0xff] %v899_v62  ;;  %v536_v57 = vld [vmem:[%s1744_s26 + $0x180] sm:$0xff]  ;;  %v537_v61 = vld [vmem:[%s1744_s26 + $0x188] sm:$0xff]  ;;  %v915_v62 = vmul.f32 %v659_v47, %v659_v47  ;;  %v663_v63 = vsub.f32 %v407_v52, %v535_v53  ;;  %v410_v0 = vld [vmem:[%s1736_s5 + $0x190] sm:$0xff] }
  0x49   : > { %1156 = vst [vmem:[%s1772_s21 + $0xe0] sm:$0xff] %v900_v2  ;;  %v538_v1 = vld [vmem:[%s1744_s26 + $0x190] sm:$0xff]  ;;  %v916_v2 = vmul.f32 %v660_v51, %v660_v51  ;;  %v664_v3 = vsub.f32 %v408_v56, %v536_v57  ;;  %v411_v4 = vld [vmem:[%s1736_s5 + $0x198] sm:$0xff]  ;;  %v665_v7 = vsub.f32 %v409_v60, %v537_v61  ;;  %v412_v8 = vld [vmem:[%s1736_s5 + $0x1a0] sm:$0xff] }
  0x4a   : > { %1157 = vst [vmem:[%s1772_s21 + $0xe8] sm:$0xff] %v901_v6  ;;  %v539_v5 = vld [vmem:[%s1744_s26 + $0x198] sm:$0xff]  ;;  %v917_v6 = vmul.f32 %v661_v55, %v661_v55  ;;  %v540_v9 = vld [vmem:[%s1744_s26 + $0x1a0] sm:$0xff]  ;;  %v666_v11 = vsub.f32 %v410_v0, %v538_v1  ;;  %v413_v12 = vld [vmem:[%s1736_s5 + $0x1a8] sm:$0xff] }
  0x4b   : > { %1158 = vst [vmem:[%s1772_s21 + $0xf0] sm:$0xff] %v902_v10  ;;  %v918_v10 = vmul.f32 %v662_v59, %v662_v59  ;;  %v541_v13 = vld [vmem:[%s1744_s26 + $0x1a8] sm:$0xff]  ;;  %v667_v15 = vsub.f32 %v411_v4, %v539_v5  ;;  %v414_v16 = vld [vmem:[%s1736_s5 + $0x1b0] sm:$0xff]  ;;  %v668_v19 = vsub.f32 %v412_v8, %v540_v9  ;;  %v415_v20 = vld [vmem:[%s1736_s5 + $0x1b8] sm:$0xff] }
  0x4c   : > { %1159 = vst [vmem:[%s1772_s21 + $0xf8] sm:$0xff] %v903_v14  ;;  %v919_v14 = vmul.f32 %v663_v63, %v663_v63  ;;  %v542_v17 = vld [vmem:[%s1744_s26 + $0x1b0] sm:$0xff]  ;;  %v543_v21 = vld [vmem:[%s1744_s26 + $0x1b8] sm:$0xff]  ;;  %v669_v23 = vsub.f32 %v413_v12, %v541_v13  ;;  %v416_v24 = vld [vmem:[%s1736_s5 + $0x1c0] sm:$0xff] }
  0x4d   : > { %1160 = vst [vmem:[%s1772_s21 + $0x100] sm:$0xff] %v904_v18  ;;  %v920_v18 = vmul.f32 %v664_v3, %v664_v3  ;;  %v544_v25 = vld [vmem:[%s1744_s26 + $0x1c0] sm:$0xff]  ;;  %v670_v27 = vsub.f32 %v414_v16, %v542_v17  ;;  %v417_v28 = vld [vmem:[%s1736_s5 + $0x1c8] sm:$0xff]  ;;  %v671_v31 = vsub.f32 %v415_v20, %v543_v21  ;;  %v418_v32 = vld [vmem:[%s1736_s5 + $0x1d0] sm:$0xff] }
  0x4e   : > { %1161 = vst [vmem:[%s1772_s21 + $0x108] sm:$0xff] %v905_v22  ;;  %v921_v22 = vmul.f32 %v665_v7, %v665_v7  ;;  %v545_v29 = vld [vmem:[%s1744_s26 + $0x1c8] sm:$0xff]  ;;  %v546_v33 = vld [vmem:[%s1744_s26 + $0x1d0] sm:$0xff]  ;;  %v672_v35 = vsub.f32 %v416_v24, %v544_v25  ;;  %v419_v36 = vld [vmem:[%s1736_s5 + $0x1d8] sm:$0xff] }
  0x4f   : > { %1162 = vst [vmem:[%s1772_s21 + $0x110] sm:$0xff] %v906_v26  ;;  %v922_v26 = vmul.f32 %v666_v11, %v666_v11  ;;  %v547_v37 = vld [vmem:[%s1744_s26 + $0x1d8] sm:$0xff]  ;;  %v673_v39 = vsub.f32 %v417_v28, %v545_v29  ;;  %v420_v40 = vld [vmem:[%s1736_s5 + $0x1e0] sm:$0xff]  ;;  %v674_v43 = vsub.f32 %v418_v32, %v546_v33  ;;  %v421_v44 = vld [vmem:[%s1736_s5 + $0x1e8] sm:$0xff] }
  0x50   : > { %1163 = vst [vmem:[%s1772_s21 + $0x118] sm:$0xff] %v907_v30  ;;  %v923_v30 = vmul.f32 %v667_v15, %v667_v15  ;;  %v548_v41 = vld [vmem:[%s1744_s26 + $0x1e0] sm:$0xff]  ;;  %v549_v45 = vld [vmem:[%s1744_s26 + $0x1e8] sm:$0xff]  ;;  %v675_v47 = vsub.f32 %v419_v36, %v547_v37  ;;  %v422_v48 = vld [vmem:[%s1736_s5 + $0x1f0] sm:$0xff] }
  0x51   : > { %1164 = vst [vmem:[%s1772_s21 + $0x120] sm:$0xff] %v908_v34  ;;  %v924_v34 = vmul.f32 %v668_v19, %v668_v19  ;;  %v550_v49 = vld [vmem:[%s1744_s26 + $0x1f0] sm:$0xff]  ;;  %v676_v51 = vsub.f32 %v420_v40, %v548_v41  ;;  %v423_v52 = vld [vmem:[%s1736_s5 + $0x1f8] sm:$0xff]  ;;  %v677_v55 = vsub.f32 %v421_v44, %v549_v45  ;;  %v424_v56 = vld [vmem:[%s1736_s5 + $0x200] sm:$0xff] }
  0x52   : > { %1165 = vst [vmem:[%s1772_s21 + $0x128] sm:$0xff] %v909_v38  ;;  %v925_v38 = vmul.f32 %v669_v23, %v669_v23  ;;  %v551_v53 = vld [vmem:[%s1744_s26 + $0x1f8] sm:$0xff]  ;;  %v552_v57 = vld [vmem:[%s1744_s26 + $0x200] sm:$0xff]  ;;  %v678_v59 = vsub.f32 %v422_v48, %v550_v49  ;;  %v425_v60 = vld [vmem:[%s1736_s5 + $0x208] sm:$0xff] }
  0x53   : > { %1166 = vst [vmem:[%s1772_s21 + $0x130] sm:$0xff] %v910_v42  ;;  %v926_v42 = vmul.f32 %v670_v27, %v670_v27  ;;  %v553_v61 = vld [vmem:[%s1744_s26 + $0x208] sm:$0xff]  ;;  %v679_v63 = vsub.f32 %v423_v52, %v551_v53  ;;  %v426_v0 = vld [vmem:[%s1736_s5 + $0x210] sm:$0xff]  ;;  %v680_v3 = vsub.f32 %v424_v56, %v552_v57  ;;  %v427_v4 = vld [vmem:[%s1736_s5 + $0x218] sm:$0xff] }
  0x54   : > { %1167 = vst [vmem:[%s1772_s21 + $0x138] sm:$0xff] %v911_v46  ;;  %v927_v46 = vmul.f32 %v671_v31, %v671_v31  ;;  %v554_v1 = vld [vmem:[%s1744_s26 + $0x210] sm:$0xff]  ;;  %v555_v5 = vld [vmem:[%s1744_s26 + $0x218] sm:$0xff]  ;;  %v681_v7 = vsub.f32 %v425_v60, %v553_v61  ;;  %v428_v8 = vld [vmem:[%s1736_s5 + $0x220] sm:$0xff] }
  0x55   : > { %1168 = vst [vmem:[%s1772_s21 + $0x140] sm:$0xff] %v912_v50  ;;  %v928_v50 = vmul.f32 %v672_v35, %v672_v35  ;;  %v556_v9 = vld [vmem:[%s1744_s26 + $0x220] sm:$0xff]  ;;  %v682_v11 = vsub.f32 %v426_v0, %v554_v1  ;;  %v429_v12 = vld [vmem:[%s1736_s5 + $0x228] sm:$0xff]  ;;  %v683_v15 = vsub.f32 %v427_v4, %v555_v5  ;;  %v430_v16 = vld [vmem:[%s1736_s5 + $0x230] sm:$0xff] }
  0x56   : > { %1169 = vst [vmem:[%s1772_s21 + $0x148] sm:$0xff] %v913_v54  ;;  %v929_v54 = vmul.f32 %v673_v39, %v673_v39  ;;  %v557_v13 = vld [vmem:[%s1744_s26 + $0x228] sm:$0xff]  ;;  %v558_v17 = vld [vmem:[%s1744_s26 + $0x230] sm:$0xff]  ;;  %v684_v19 = vsub.f32 %v428_v8, %v556_v9  ;;  %v431_v20 = vld [vmem:[%s1736_s5 + $0x238] sm:$0xff] }
  0x57   : > { %1170 = vst [vmem:[%s1772_s21 + $0x150] sm:$0xff] %v914_v58  ;;  %v930_v58 = vmul.f32 %v674_v43, %v674_v43  ;;  %v559_v21 = vld [vmem:[%s1744_s26 + $0x238] sm:$0xff]  ;;  %v685_v23 = vsub.f32 %v429_v12, %v557_v13  ;;  %v432_v24 = vld [vmem:[%s1736_s5 + $0x240] sm:$0xff]  ;;  %v686_v27 = vsub.f32 %v430_v16, %v558_v17  ;;  %v433_v28 = vld [vmem:[%s1736_s5 + $0x248] sm:$0xff] }
  0x58   : > { %1171 = vst [vmem:[%s1772_s21 + $0x158] sm:$0xff] %v915_v62  ;;  %v931_v62 = vmul.f32 %v675_v47, %v675_v47  ;;  %v560_v25 = vld [vmem:[%s1744_s26 + $0x240] sm:$0xff]  ;;  %v561_v29 = vld [vmem:[%s1744_s26 + $0x248] sm:$0xff]  ;;  %v687_v31 = vsub.f32 %v431_v20, %v559_v21  ;;  %v434_v32 = vld [vmem:[%s1736_s5 + $0x250] sm:$0xff] }
  0x59   : > { %1172 = vst [vmem:[%s1772_s21 + $0x160] sm:$0xff] %v916_v2  ;;  %v932_v2 = vmul.f32 %v676_v51, %v676_v51  ;;  %v562_v33 = vld [vmem:[%s1744_s26 + $0x250] sm:$0xff]  ;;  %v688_v35 = vsub.f32 %v432_v24, %v560_v25  ;;  %v435_v36 = vld [vmem:[%s1736_s5 + $0x258] sm:$0xff]  ;;  %v689_v39 = vsub.f32 %v433_v28, %v561_v29  ;;  %v436_v40 = vld [vmem:[%s1736_s5 + $0x260] sm:$0xff] }
  0x5a   : > { %1173 = vst [vmem:[%s1772_s21 + $0x168] sm:$0xff] %v917_v6  ;;  %v933_v6 = vmul.f32 %v677_v55, %v677_v55  ;;  %v563_v37 = vld [vmem:[%s1744_s26 + $0x258] sm:$0xff]  ;;  %v564_v41 = vld [vmem:[%s1744_s26 + $0x260] sm:$0xff]  ;;  %v690_v43 = vsub.f32 %v434_v32, %v562_v33  ;;  %v437_v44 = vld [vmem:[%s1736_s5 + $0x268] sm:$0xff] }
  0x5b   : > { %1174 = vst [vmem:[%s1772_s21 + $0x170] sm:$0xff] %v918_v10  ;;  %v934_v10 = vmul.f32 %v678_v59, %v678_v59  ;;  %v565_v45 = vld [vmem:[%s1744_s26 + $0x268] sm:$0xff]  ;;  %v691_v47 = vsub.f32 %v435_v36, %v563_v37  ;;  %v438_v48 = vld [vmem:[%s1736_s5 + $0x270] sm:$0xff]  ;;  %v692_v51 = vsub.f32 %v436_v40, %v564_v41  ;;  %v439_v52 = vld [vmem:[%s1736_s5 + $0x278] sm:$0xff] }
  0x5c   : > { %1175 = vst [vmem:[%s1772_s21 + $0x178] sm:$0xff] %v919_v14  ;;  %v935_v14 = vmul.f32 %v679_v63, %v679_v63  ;;  %v566_v49 = vld [vmem:[%s1744_s26 + $0x270] sm:$0xff]  ;;  %v567_v53 = vld [vmem:[%s1744_s26 + $0x278] sm:$0xff]  ;;  %v693_v55 = vsub.f32 %v437_v44, %v565_v45  ;;  %v440_v56 = vld [vmem:[%s1736_s5 + $0x280] sm:$0xff] }
  0x5d   : > { %1176 = vst [vmem:[%s1772_s21 + $0x180] sm:$0xff] %v920_v18  ;;  %v936_v18 = vmul.f32 %v680_v3, %v680_v3  ;;  %v568_v57 = vld [vmem:[%s1744_s26 + $0x280] sm:$0xff]  ;;  %v694_v59 = vsub.f32 %v438_v48, %v566_v49  ;;  %v441_v60 = vld [vmem:[%s1736_s5 + $0x288] sm:$0xff]  ;;  %v695_v63 = vsub.f32 %v439_v52, %v567_v53  ;;  %v442_v0 = vld [vmem:[%s1736_s5 + $0x290] sm:$0xff] }
  0x5e   : > { %1177 = vst [vmem:[%s1772_s21 + $0x188] sm:$0xff] %v921_v22  ;;  %v937_v22 = vmul.f32 %v681_v7, %v681_v7  ;;  %v569_v61 = vld [vmem:[%s1744_s26 + $0x288] sm:$0xff]  ;;  %v570_v1 = vld [vmem:[%s1744_s26 + $0x290] sm:$0xff]  ;;  %v696_v3 = vsub.f32 %v440_v56, %v568_v57  ;;  %v443_v4 = vld [vmem:[%s1736_s5 + $0x298] sm:$0xff] }
  0x5f   : > { %1178 = vst [vmem:[%s1772_s21 + $0x190] sm:$0xff] %v922_v26  ;;  %v938_v26 = vmul.f32 %v682_v11, %v682_v11  ;;  %v571_v5 = vld [vmem:[%s1744_s26 + $0x298] sm:$0xff]  ;;  %v697_v7 = vsub.f32 %v441_v60, %v569_v61  ;;  %v444_v8 = vld [vmem:[%s1736_s5 + $0x2a0] sm:$0xff]  ;;  %v698_v11 = vsub.f32 %v442_v0, %v570_v1  ;;  %v445_v12 = vld [vmem:[%s1736_s5 + $0x2a8] sm:$0xff] }
  0x60   : > { %1179 = vst [vmem:[%s1772_s21 + $0x198] sm:$0xff] %v923_v30  ;;  %v939_v30 = vmul.f32 %v683_v15, %v683_v15  ;;  %v572_v9 = vld [vmem:[%s1744_s26 + $0x2a0] sm:$0xff]  ;;  %v573_v13 = vld [vmem:[%s1744_s26 + $0x2a8] sm:$0xff]  ;;  %v699_v15 = vsub.f32 %v443_v4, %v571_v5  ;;  %v446_v16 = vld [vmem:[%s1736_s5 + $0x2b0] sm:$0xff] }
  0x61   : > { %1180 = vst [vmem:[%s1772_s21 + $0x1a0] sm:$0xff] %v924_v34  ;;  %v940_v34 = vmul.f32 %v684_v19, %v684_v19  ;;  %v574_v17 = vld [vmem:[%s1744_s26 + $0x2b0] sm:$0xff]  ;;  %v700_v19 = vsub.f32 %v444_v8, %v572_v9  ;;  %v447_v20 = vld [vmem:[%s1736_s5 + $0x2b8] sm:$0xff]  ;;  %v448_v24 = vld [vmem:[%s1736_s5 + $0x2c0] sm:$0xff] }
  0x62   : > { %1181 = vst [vmem:[%s1772_s21 + $0x1a8] sm:$0xff] %v925_v38  ;;  %v941_v38 = vmul.f32 %v685_v23, %v685_v23  ;;  %v575_v21 = vld [vmem:[%s1744_s26 + $0x2b8] sm:$0xff]  ;;  %v701_v23 = vsub.f32 %v445_v12, %v573_v13  ;;  %v576_v25 = vld [vmem:[%s1744_s26 + $0x2c0] sm:$0xff]  ;;  %v449_v28 = vld [vmem:[%s1736_s5 + $0x2c8] sm:$0xff] }
  0x63   : > { %1182 = vst [vmem:[%s1772_s21 + $0x1b0] sm:$0xff] %v926_v42  ;;  %v942_v42 = vmul.f32 %v686_v27, %v686_v27  ;;  %v702_v27 = vsub.f32 %v446_v16, %v574_v17  ;;  %v577_v29 = vld [vmem:[%s1744_s26 + $0x2c8] sm:$0xff]  ;;  %v450_v32 = vld [vmem:[%s1736_s5 + $0x2d0] sm:$0xff]  ;;  %v451_v36 = vld [vmem:[%s1736_s5 + $0x2d8] sm:$0xff] }
  0x64   : > { %1183 = vst [vmem:[%s1772_s21 + $0x1b8] sm:$0xff] %v927_v46  ;;  %v943_v46 = vmul.f32 %v687_v31, %v687_v31  ;;  %v703_v31 = vsub.f32 %v447_v20, %v575_v21  ;;  %v578_v33 = vld [vmem:[%s1744_s26 + $0x2d0] sm:$0xff]  ;;  %v579_v37 = vld [vmem:[%s1744_s26 + $0x2d8] sm:$0xff]  ;;  %v452_v40 = vld [vmem:[%s1736_s5 + $0x2e0] sm:$0xff] }
  0x65   : > { %1184 = vst [vmem:[%s1772_s21 + $0x1c0] sm:$0xff] %v928_v50  ;;  %v944_v50 = vmul.f32 %v688_v35, %v688_v35  ;;  %v704_v35 = vsub.f32 %v448_v24, %v576_v25  ;;  %v580_v41 = vld [vmem:[%s1744_s26 + $0x2e0] sm:$0xff]  ;;  %v453_v44 = vld [vmem:[%s1736_s5 + $0x2e8] sm:$0xff]  ;;  %v454_v48 = vld [vmem:[%s1736_s5 + $0x2f0] sm:$0xff] }
  0x66   : > { %1185 = vst [vmem:[%s1772_s21 + $0x1c8] sm:$0xff] %v929_v54  ;;  %v945_v54 = vmul.f32 %v689_v39, %v689_v39  ;;  %v705_v39 = vsub.f32 %v449_v28, %v577_v29  ;;  %v581_v45 = vld [vmem:[%s1744_s26 + $0x2e8] sm:$0xff]  ;;  %v582_v49 = vld [vmem:[%s1744_s26 + $0x2f0] sm:$0xff]  ;;  %v455_v52 = vld [vmem:[%s1736_s5 + $0x2f8] sm:$0xff] }
  0x67   : > { %1186 = vst [vmem:[%s1772_s21 + $0x1d0] sm:$0xff] %v930_v58  ;;  %v946_v58 = vmul.f32 %v690_v43, %v690_v43  ;;  %v706_v43 = vsub.f32 %v450_v32, %v578_v33  ;;  %v583_v53 = vld [vmem:[%s1744_s26 + $0x2f8] sm:$0xff]  ;;  %v456_v56 = vld [vmem:[%s1736_s5 + $0x300] sm:$0xff]  ;;  %v457_v60 = vld [vmem:[%s1736_s5 + $0x308] sm:$0xff] }
  0x68   : > { %1187 = vst [vmem:[%s1772_s21 + $0x1d8] sm:$0xff] %v931_v62  ;;  %v947_v62 = vmul.f32 %v691_v47, %v691_v47  ;;  %v707_v47 = vsub.f32 %v451_v36, %v579_v37  ;;  %v584_v57 = vld [vmem:[%s1744_s26 + $0x300] sm:$0xff]  ;;  %v585_v61 = vld [vmem:[%s1744_s26 + $0x308] sm:$0xff]  ;;  %v458_v0 = vld [vmem:[%s1736_s5 + $0x310] sm:$0xff] }
  0x69   : > { %1188 = vst [vmem:[%s1772_s21 + $0x1e0] sm:$0xff] %v932_v2  ;;  %v948_v2 = vmul.f32 %v692_v51, %v692_v51  ;;  %v708_v51 = vsub.f32 %v452_v40, %v580_v41  ;;  %v586_v1 = vld [vmem:[%s1744_s26 + $0x310] sm:$0xff]  ;;  %v459_v4 = vld [vmem:[%s1736_s5 + $0x318] sm:$0xff]  ;;  %v460_v8 = vld [vmem:[%s1736_s5 + $0x320] sm:$0xff] }
  0x6a   : > { %1189 = vst [vmem:[%s1772_s21 + $0x1e8] sm:$0xff] %v933_v6  ;;  %v949_v6 = vmul.f32 %v693_v55, %v693_v55  ;;  %v709_v55 = vsub.f32 %v453_v44, %v581_v45  ;;  %v587_v5 = vld [vmem:[%s1744_s26 + $0x318] sm:$0xff]  ;;  %v588_v9 = vld [vmem:[%s1744_s26 + $0x320] sm:$0xff]  ;;  %v461_v12 = vld [vmem:[%s1736_s5 + $0x328] sm:$0xff] }
  0x6b   : > { %1190 = vst [vmem:[%s1772_s21 + $0x1f0] sm:$0xff] %v934_v10  ;;  %v950_v10 = vmul.f32 %v694_v59, %v694_v59  ;;  %v710_v59 = vsub.f32 %v454_v48, %v582_v49  ;;  %v589_v13 = vld [vmem:[%s1744_s26 + $0x328] sm:$0xff]  ;;  %v462_v16 = vld [vmem:[%s1736_s5 + $0x330] sm:$0xff]  ;;  %v463_v20 = vld [vmem:[%s1736_s5 + $0x338] sm:$0xff] }
  0x6c   : > { %1191 = vst [vmem:[%s1772_s21 + $0x1f8] sm:$0xff] %v935_v14  ;;  %v951_v14 = vmul.f32 %v695_v63, %v695_v63  ;;  %v711_v63 = vsub.f32 %v455_v52, %v583_v53  ;;  %v590_v17 = vld [vmem:[%s1744_s26 + $0x330] sm:$0xff]  ;;  %v591_v21 = vld [vmem:[%s1744_s26 + $0x338] sm:$0xff]  ;;  %v464_v24 = vld [vmem:[%s1736_s5 + $0x340] sm:$0xff] }
  0x6d   : > { %1192 = vst [vmem:[%s1772_s21 + $0x200] sm:$0xff] %v936_v18  ;;  %v952_v18 = vmul.f32 %v696_v3, %v696_v3  ;;  %v712_v3 = vsub.f32 %v456_v56, %v584_v57  ;;  %v592_v25 = vld [vmem:[%s1744_s26 + $0x340] sm:$0xff]  ;;  %v465_v28 = vld [vmem:[%s1736_s5 + $0x348] sm:$0xff]  ;;  %v466_v32 = vld [vmem:[%s1736_s5 + $0x350] sm:$0xff] }
  0x6e   : > { %1193 = vst [vmem:[%s1772_s21 + $0x208] sm:$0xff] %v937_v22  ;;  %v953_v22 = vmul.f32 %v697_v7, %v697_v7  ;;  %v713_v7 = vsub.f32 %v457_v60, %v585_v61  ;;  %v593_v29 = vld [vmem:[%s1744_s26 + $0x348] sm:$0xff]  ;;  %v594_v33 = vld [vmem:[%s1744_s26 + $0x350] sm:$0xff]  ;;  %v467_v36 = vld [vmem:[%s1736_s5 + $0x358] sm:$0xff] }
  0x6f   : > { %1194 = vst [vmem:[%s1772_s21 + $0x210] sm:$0xff] %v938_v26  ;;  %v954_v26 = vmul.f32 %v698_v11, %v698_v11  ;;  %v714_v11 = vsub.f32 %v458_v0, %v586_v1  ;;  %v595_v37 = vld [vmem:[%s1744_s26 + $0x358] sm:$0xff]  ;;  %v468_v40 = vld [vmem:[%s1736_s5 + $0x360] sm:$0xff]  ;;  %v469_v44 = vld [vmem:[%s1736_s5 + $0x368] sm:$0xff] }
  0x70   : > { %1195 = vst [vmem:[%s1772_s21 + $0x218] sm:$0xff] %v939_v30  ;;  %v955_v30 = vmul.f32 %v699_v15, %v699_v15  ;;  %v715_v15 = vsub.f32 %v459_v4, %v587_v5  ;;  %v596_v41 = vld [vmem:[%s1744_s26 + $0x360] sm:$0xff]  ;;  %v597_v45 = vld [vmem:[%s1744_s26 + $0x368] sm:$0xff]  ;;  %v470_v48 = vld [vmem:[%s1736_s5 + $0x370] sm:$0xff] }
  0x71   : > { %1196 = vst [vmem:[%s1772_s21 + $0x220] sm:$0xff] %v940_v34  ;;  %v956_v34 = vmul.f32 %v700_v19, %v700_v19  ;;  %v716_v19 = vsub.f32 %v460_v8, %v588_v9  ;;  %v598_v49 = vld [vmem:[%s1744_s26 + $0x370] sm:$0xff]  ;;  %v471_v52 = vld [vmem:[%s1736_s5 + $0x378] sm:$0xff]  ;;  %v472_v56 = vld [vmem:[%s1736_s5 + $0x380] sm:$0xff] }
  0x72   : > { %1197 = vst [vmem:[%s1772_s21 + $0x228] sm:$0xff] %v941_v38  ;;  %v957_v38 = vmul.f32 %v701_v23, %v701_v23  ;;  %v717_v23 = vsub.f32 %v461_v12, %v589_v13  ;;  %v599_v53 = vld [vmem:[%s1744_s26 + $0x378] sm:$0xff]  ;;  %v600_v57 = vld [vmem:[%s1744_s26 + $0x380] sm:$0xff]  ;;  %v473_v60 = vld [vmem:[%s1736_s5 + $0x388] sm:$0xff] }
  0x73   : > { %1198 = vst [vmem:[%s1772_s21 + $0x230] sm:$0xff] %v942_v42  ;;  %v958_v42 = vmul.f32 %v702_v27, %v702_v27  ;;  %v718_v27 = vsub.f32 %v462_v16, %v590_v17  ;;  %v601_v61 = vld [vmem:[%s1744_s26 + $0x388] sm:$0xff]  ;;  %v474_v0 = vld [vmem:[%s1736_s5 + $0x390] sm:$0xff]  ;;  %v475_v4 = vld [vmem:[%s1736_s5 + $0x398] sm:$0xff] }
  0x74   : > { %1199 = vst [vmem:[%s1772_s21 + $0x238] sm:$0xff] %v943_v46  ;;  %v959_v46 = vmul.f32 %v703_v31, %v703_v31  ;;  %v719_v31 = vsub.f32 %v463_v20, %v591_v21  ;;  %v602_v1 = vld [vmem:[%s1744_s26 + $0x390] sm:$0xff]  ;;  %v603_v5 = vld [vmem:[%s1744_s26 + $0x398] sm:$0xff]  ;;  %v476_v8 = vld [vmem:[%s1736_s5 + $0x3a0] sm:$0xff] }
  0x75   : > { %1200 = vst [vmem:[%s1772_s21 + $0x240] sm:$0xff] %v944_v50  ;;  %v960_v50 = vmul.f32 %v704_v35, %v704_v35  ;;  %v720_v35 = vsub.f32 %v464_v24, %v592_v25  ;;  %v604_v9 = vld [vmem:[%s1744_s26 + $0x3a0] sm:$0xff]  ;;  %v477_v12 = vld [vmem:[%s1736_s5 + $0x3a8] sm:$0xff]  ;;  %v478_v16 = vld [vmem:[%s1736_s5 + $0x3b0] sm:$0xff] }
  0x76   : > { %1201 = vst [vmem:[%s1772_s21 + $0x248] sm:$0xff] %v945_v54  ;;  %v961_v54 = vmul.f32 %v705_v39, %v705_v39  ;;  %v721_v39 = vsub.f32 %v465_v28, %v593_v29  ;;  %v605_v13 = vld [vmem:[%s1744_s26 + $0x3a8] sm:$0xff]  ;;  %v606_v17 = vld [vmem:[%s1744_s26 + $0x3b0] sm:$0xff]  ;;  %v479_v20 = vld [vmem:[%s1736_s5 + $0x3b8] sm:$0xff] }
  0x77   : > { %1202 = vst [vmem:[%s1772_s21 + $0x250] sm:$0xff] %v946_v58  ;;  %v962_v58 = vmul.f32 %v706_v43, %v706_v43  ;;  %v722_v43 = vsub.f32 %v466_v32, %v594_v33  ;;  %v607_v21 = vld [vmem:[%s1744_s26 + $0x3b8] sm:$0xff]  ;;  %v480_v24 = vld [vmem:[%s1736_s5 + $0x3c0] sm:$0xff]  ;;  %v481_v28 = vld [vmem:[%s1736_s5 + $0x3c8] sm:$0xff] }
  0x78   : > { %1203 = vst [vmem:[%s1772_s21 + $0x258] sm:$0xff] %v947_v62  ;;  %v963_v62 = vmul.f32 %v707_v47, %v707_v47  ;;  %v723_v47 = vsub.f32 %v467_v36, %v595_v37  ;;  %v608_v25 = vld [vmem:[%s1744_s26 + $0x3c0] sm:$0xff]  ;;  %v609_v29 = vld [vmem:[%s1744_s26 + $0x3c8] sm:$0xff]  ;;  %v482_v32 = vld [vmem:[%s1736_s5 + $0x3d0] sm:$0xff] }
  0x79   : > { %1204 = vst [vmem:[%s1772_s21 + $0x260] sm:$0xff] %v948_v2  ;;  %v964_v2 = vmul.f32 %v708_v51, %v708_v51  ;;  %v724_v51 = vsub.f32 %v468_v40, %v596_v41  ;;  %v610_v33 = vld [vmem:[%s1744_s26 + $0x3d0] sm:$0xff]  ;;  %v483_v36 = vld [vmem:[%s1736_s5 + $0x3d8] sm:$0xff]  ;;  %v484_v40 = vld [vmem:[%s1736_s5 + $0x3e0] sm:$0xff] }
  0x7a   : > { %1205 = vst [vmem:[%s1772_s21 + $0x268] sm:$0xff] %v949_v6  ;;  %v965_v6 = vmul.f32 %v709_v55, %v709_v55  ;;  %v725_v55 = vsub.f32 %v469_v44, %v597_v45  ;;  %v611_v37 = vld [vmem:[%s1744_s26 + $0x3d8] sm:$0xff]  ;;  %v612_v41 = vld [vmem:[%s1744_s26 + $0x3e0] sm:$0xff]  ;;  %v485_v44 = vld [vmem:[%s1736_s5 + $0x3e8] sm:$0xff] }
  0x7b   : > { %1206 = vst [vmem:[%s1772_s21 + $0x270] sm:$0xff] %v950_v10  ;;  %v966_v10 = vmul.f32 %v710_v59, %v710_v59  ;;  %v726_v59 = vsub.f32 %v470_v48, %v598_v49  ;;  %v613_v45 = vld [vmem:[%s1744_s26 + $0x3e8] sm:$0xff]  ;;  %v486_v48 = vld [vmem:[%s1736_s5 + $0x3f0] sm:$0xff] }
  0x7c   : > { %1207 = vst [vmem:[%s1772_s21 + $0x278] sm:$0xff] %v951_v14  ;;  %v967_v14 = vmul.f32 %v711_v63, %v711_v63  ;;  %v727_v63 = vsub.f32 %v471_v52, %v599_v53  ;;  %v614_v49 = vld [vmem:[%s1744_s26 + $0x3f0] sm:$0xff]  ;;  %v487_v52 = vld [vmem:[%s1736_s5 + $0x3f8] sm:$0xff] }
  0x7d   : > { %1208 = vst [vmem:[%s1772_s21 + $0x280] sm:$0xff] %v952_v18  ;;  %v968_v18 = vmul.f32 %v712_v3, %v712_v3  ;;  %v728_v3 = vsub.f32 %v472_v56, %v600_v57  ;;  %v615_v53 = vld [vmem:[%s1744_s26 + $0x3f8] sm:$0xff]  ;;  %v742_v57 = vsub.f32 %v486_v48, %v614_v49 }
  0x7e   : > { %1209 = vst [vmem:[%s1772_s21 + $0x288] sm:$0xff] %v953_v22  ;;  %v969_v22 = vmul.f32 %v713_v7, %v713_v7  ;;  %v729_v7 = vsub.f32 %v473_v60, %v601_v61 }
  0x7f   : > { %1210 = vst [vmem:[%s1772_s21 + $0x290] sm:$0xff] %v954_v26  ;;  %v970_v26 = vmul.f32 %v714_v11, %v714_v11  ;;  %v730_v11 = vsub.f32 %v474_v0, %v602_v1 }
  0x80   : > { %1211 = vst [vmem:[%s1772_s21 + $0x298] sm:$0xff] %v955_v30  ;;  %v971_v30 = vmul.f32 %v715_v15, %v715_v15  ;;  %v731_v15 = vsub.f32 %v475_v4, %v603_v5 }
  0x81   : > { %1212 = vst [vmem:[%s1772_s21 + $0x2a0] sm:$0xff] %v956_v34  ;;  %v972_v34 = vmul.f32 %v716_v19, %v716_v19  ;;  %v732_v19 = vsub.f32 %v476_v8, %v604_v9 }
  0x82   : > { %1213 = vst [vmem:[%s1772_s21 + $0x2a8] sm:$0xff] %v957_v38  ;;  %v973_v38 = vmul.f32 %v717_v23, %v717_v23  ;;  %v733_v23 = vsub.f32 %v477_v12, %v605_v13 }
  0x83   : > { %1214 = vst [vmem:[%s1772_s21 + $0x2b0] sm:$0xff] %v958_v42  ;;  %v974_v42 = vmul.f32 %v718_v27, %v718_v27  ;;  %v734_v27 = vsub.f32 %v478_v16, %v606_v17 }
  0x84   : > { %1215 = vst [vmem:[%s1772_s21 + $0x2b8] sm:$0xff] %v959_v46  ;;  %v975_v46 = vmul.f32 %v719_v31, %v719_v31  ;;  %v735_v31 = vsub.f32 %v479_v20, %v607_v21 }
  0x85   : > { %1216 = vst [vmem:[%s1772_s21 + $0x2c0] sm:$0xff] %v960_v50  ;;  %v976_v50 = vmul.f32 %v720_v35, %v720_v35  ;;  %v736_v35 = vsub.f32 %v480_v24, %v608_v25 }
  0x86   : > { %1217 = vst [vmem:[%s1772_s21 + $0x2c8] sm:$0xff] %v961_v54  ;;  %v977_v54 = vmul.f32 %v721_v39, %v721_v39  ;;  %v737_v39 = vsub.f32 %v481_v28, %v609_v29 }
  0x87   : > { %1218 = vst [vmem:[%s1772_s21 + $0x2d0] sm:$0xff] %v962_v58  ;;  %v978_v58 = vmul.f32 %v722_v43, %v722_v43  ;;  %v738_v43 = vsub.f32 %v482_v32, %v610_v33 }
  0x88   : > { %1219 = vst [vmem:[%s1772_s21 + $0x2d8] sm:$0xff] %v963_v62  ;;  %v979_v62 = vmul.f32 %v723_v47, %v723_v47  ;;  %v739_v47 = vsub.f32 %v483_v36, %v611_v37 }
  0x89   : > { %1220 = vst [vmem:[%s1772_s21 + $0x2e0] sm:$0xff] %v964_v2  ;;  %v980_v2 = vmul.f32 %v724_v51, %v724_v51  ;;  %v740_v51 = vsub.f32 %v484_v40, %v612_v41  ;;  %v994_v56 = vmul.f32 %v738_v43, %v738_v43 }
  0x8a   : > { %1221 = vst [vmem:[%s1772_s21 + $0x2e8] sm:$0xff] %v965_v6  ;;  %v981_v6 = vmul.f32 %v725_v55, %v725_v55  ;;  %v741_v55 = vsub.f32 %v485_v44, %v613_v45 }
  0x8b   : > { %1222 = vst [vmem:[%s1772_s21 + $0x2f0] sm:$0xff] %v966_v10  ;;  %v982_v10 = vmul.f32 %v726_v59, %v726_v59  ;;  %v743_v59 = vsub.f32 %v487_v52, %v615_v53  ;;  %v996_v60 = vmul.f32 %v740_v51, %v740_v51 }
  0x8c   : > { %1223 = vst [vmem:[%s1772_s21 + $0x2f8] sm:$0xff] %v967_v14  ;;  %v983_v14 = vmul.f32 %v727_v63, %v727_v63  ;;  %v997_v61 = vmul.f32 %v741_v55, %v741_v55 }
  0x8d   : > { %1224 = vst [vmem:[%s1772_s21 + $0x300] sm:$0xff] %v968_v18  ;;  %v984_v18 = vmul.f32 %v728_v3, %v728_v3  ;;  %v999_v63 = vmul.f32 %v743_v59, %v743_v59 }
  0x8e   : > { %1225 = vst [vmem:[%s1772_s21 + $0x308] sm:$0xff] %v969_v22  ;;  %v985_v22 = vmul.f32 %v729_v7, %v729_v7 }
  0x8f   : > { %1226 = vst [vmem:[%s1772_s21 + $0x310] sm:$0xff] %v970_v26  ;;  %v986_v26 = vmul.f32 %v730_v11, %v730_v11 }
  0x90   : > { %1227 = vst [vmem:[%s1772_s21 + $0x318] sm:$0xff] %v971_v30  ;;  %v987_v30 = vmul.f32 %v731_v15, %v731_v15 }
  0x91   : > { %1228 = vst [vmem:[%s1772_s21 + $0x320] sm:$0xff] %v972_v34  ;;  %v988_v34 = vmul.f32 %v732_v19, %v732_v19 }
  0x92   : > { %1229 = vst [vmem:[%s1772_s21 + $0x328] sm:$0xff] %v973_v38  ;;  %v989_v38 = vmul.f32 %v733_v23, %v733_v23 }
  0x93   : > { %1230 = vst [vmem:[%s1772_s21 + $0x330] sm:$0xff] %v974_v42  ;;  %v990_v42 = vmul.f32 %v734_v27, %v734_v27 }
  0x94   : > { %1231 = vst [vmem:[%s1772_s21 + $0x338] sm:$0xff] %v975_v46  ;;  %v991_v46 = vmul.f32 %v735_v31, %v735_v31 }
  0x95   : > { %1232 = vst [vmem:[%s1772_s21 + $0x340] sm:$0xff] %v976_v50  ;;  %v992_v50 = vmul.f32 %v736_v35, %v736_v35 }
  0x96   : > { %1233 = vst [vmem:[%s1772_s21 + $0x348] sm:$0xff] %v977_v54  ;;  %v993_v54 = vmul.f32 %v737_v39, %v737_v39 }
  0x97   : > { %1234 = vst [vmem:[%s1772_s21 + $0x350] sm:$0xff] %v978_v58  ;;  %v995_v58 = vmul.f32 %v739_v47, %v739_v47 }
  0x98   : > { %1235 = vst [vmem:[%s1772_s21 + $0x358] sm:$0xff] %v979_v62  ;;  %v998_v62 = vmul.f32 %v742_v57, %v742_v57 }
  0x99   : > { %1236 = vst [vmem:[%s1772_s21 + $0x360] sm:$0xff] %v980_v2 }
  0x9a   : > { %1237 = vst [vmem:[%s1772_s21 + $0x368] sm:$0xff] %v981_v6 }
  0x9b   : > { %1238 = vst [vmem:[%s1772_s21 + $0x370] sm:$0xff] %v982_v10 }
  0x9c   : > { %1239 = vst [vmem:[%s1772_s21 + $0x378] sm:$0xff] %v983_v14 }
  0x9d   : > { %1240 = vst [vmem:[%s1772_s21 + $0x380] sm:$0xff] %v984_v18 }
  0x9e   : > { %1241 = vst [vmem:[%s1772_s21 + $0x388] sm:$0xff] %v985_v22 }
  0x9f   : > { %1242 = vst [vmem:[%s1772_s21 + $0x390] sm:$0xff] %v986_v26 }
  0xa0   : > { %1243 = vst [vmem:[%s1772_s21 + $0x398] sm:$0xff] %v987_v30 }
  0xa1   : > { %1244 = vst [vmem:[%s1772_s21 + $0x3a0] sm:$0xff] %v988_v34 }
  0xa2   : > { %1245 = vst [vmem:[%s1772_s21 + $0x3a8] sm:$0xff] %v989_v38 }
  0xa3   : > { %1246 = vst [vmem:[%s1772_s21 + $0x3b0] sm:$0xff] %v990_v42 }
  0xa4   : > { %1247 = vst [vmem:[%s1772_s21 + $0x3b8] sm:$0xff] %v991_v46 }
  0xa5   : > { %1248 = vst [vmem:[%s1772_s21 + $0x3c0] sm:$0xff] %v992_v50 }
  0xa6   : > { %1249 = vst [vmem:[%s1772_s21 + $0x3c8] sm:$0xff] %v993_v54 }
  0xa7   : > { %1250 = vst [vmem:[%s1772_s21 + $0x3d0] sm:$0xff] %v994_v56 }
  0xa8   : > { %1251 = vst [vmem:[%s1772_s21 + $0x3d8] sm:$0xff] %v995_v58 }
  0xa9   : > { %1252 = vst [vmem:[%s1772_s21 + $0x3e0] sm:$0xff] %v996_v60 }
  0xaa   : > { %1253 = vst [vmem:[%s1772_s21 + $0x3e8] sm:$0xff] %v997_v61 }
  0xab   : > { %1254 = vst [vmem:[%s1772_s21 + $0x3f0] sm:$0xff] %v998_v62 }
  0xac   : > { %1255 = vst [vmem:[%s1772_s21 + $0x3f8] sm:$0xff] %v999_v63 }
  0xad   : > { %1559 = shalt.err (!%p1556_p13)
}
  0xae   : > { %s1622_s3 = smov 128   ;;  %s1623_s5 = smov 8  }
  0xaf   : > { %1404 = dma.vmem_to_hbm [thread:$0]  (%p1690_p9), %s1270_s12, 16384, %s1272_s16, %s1257_s18, %s1622_s3, %s1622_s3, %s1623_s5  }
  0xb0 PF: > { %s1286_s25 = sand.u32 1, %s1598_s9   ;;  %p1414_p0 = pnand %p1381_p12, %p1697_p11 }
  0xb1   : > { %s1287_s26 = scalar_lea.sflag [#allocation4], %s1286_s25 }
  0xb2   : > { %p1415_p1 = pneg %p1414_p0 }
  0xb4   : > { %1593 = dma.done.wait (%p1415_p1), %s1287_s26, 16384  }
  0xb5   : > { %1595 = vsyncadd (%p1415_p1), %s1287_s26, 4294950912  ;;  %s21_s14 = sadd.s32 1, %s1618_s14   ;;  %s2184_s9 = smov %s1602_s10 }
  0xb6   : > { %p18_p2 = scmp.ge.s32.totalorder %s21_s14, 4   ;;  %s2185_s10 = smov %s1606_s11 }
  0xb7   : > { %s2186_s11 = smov %s1695_s23  ;;  %s2187_s12 = smov %s1614_s13 }
  0xb8   : > { %s2188_s13 = smov %s2190_s17  ;;  %20 = sbr.rel (!%p18_p2) target bundleno = 8 (0x8), region = 90 }
  0xbd   :  { %1293 = vsyncpa [#allocation3], 1 }
  0xbe   :  { %1295 = vsyncpa [#allocation3 + $0x1], 1 }
  0xbf   :  { %1296 = vsyncpa [#allocation6], 1 }
  0xc0   :  { %1298 = vsyncpa [#allocation6 + $0x1], 1 }
  0xc1   :  { %1299 = vsyncpa [#allocation4], 1 }
  0xc2   :  { %1301 = vsyncpa [#allocation4 + $0x1], 1 }

</bundles_post_ra>
